<compile_context>
chip_gen: v7x
topology: tpu7x:2x2x1
jax: 0.10.0
libtpu: 0.0.40
codegen_flags: <defaults>
</compile_context>

<pallas_src>
import functools

import jax
import jax.numpy as jnp
from jax.experimental import pallas as pl
from jax.experimental.pallas import tpu as pltpu


def _leaky_relu(v, slope=0.2):
    # For 0 <= slope <= 1, max(v, slope*v) == leaky_relu(v, slope):
    # one mul + one max (2 VALU ops) instead of compare + select + mul.
    return jnp.maximum(v, slope * v)


def mine_kernel(x_ref, y_ref, w1x_ref, w1y_ref, b1_ref, w2_ref, b2_ref,
                w3_ref, b3_ref, o_ref):
    # Layer 1: two MXU dots (x and y streamed separately -- no wrapper concat),
    # accumulated in f32, plus fc1_bias.
    h = jnp.dot(x_ref[...], w1x_ref[...], preferred_element_type=jnp.float32)
    h = h + jnp.dot(y_ref[...], w1y_ref[...], preferred_element_type=jnp.float32)
    h = _leaky_relu(h + b1_ref[...])
    # Layer 2 (cast back to the streaming dtype so bf16 stays a 1-pass matmul).
    h = _leaky_relu(
        jnp.dot(h.astype(w2_ref.dtype), w2_ref[...],
                preferred_element_type=jnp.float32) + b2_ref[...])
    # Layer 3 (hidden -> 1): VPU multiply + lane reduction instead of an N=1
    # MXU matmul (w3 is a (1, hidden) row, b3 is (1, 1); both broadcast).
    o = _leaky_relu(
        jnp.sum(h * w3_ref[...].astype(jnp.float32), axis=-1, keepdims=True)
        + b3_ref[...])
    o_ref[...] = o.astype(o_ref.dtype)


def _round_up(n, m):
    return ((n + m - 1) // m) * m


@functools.partial(jax.jit, static_argnames=("tile_b", "act_dtype"))
def mine_forward(x, y, w1x, w1y, b1, w2, b2, w3, b3, *,
                 tile_b=4096, act_dtype=None):
    """x: (B, x_size), y: (B, y_size); returns (B, 1) float32.

    act_dtype: optional streaming dtype for activations & matmul weights
      (jnp.bfloat16 halves HBM traffic; accumulation stays f32).
    tile_b:   batch rows per grid step on the large-batch path (sweep knob).
    """
    B, x_size = x.shape
    y_size = y.shape[1]
    hidden = w2.shape[0]

    if act_dtype is not None:
        x, y = x.astype(act_dtype), y.astype(act_dtype)
        w1x, w1y = w1x.astype(act_dtype), w1y.astype(act_dtype)
        w2, w3 = w2.astype(act_dtype), w3.astype(act_dtype)
    # Biases stay f32 (added after the f32-accumulated matmuls).
    b1, b2, b3 = (b.astype(jnp.float32) for b in (b1, b2, b3))
    weights = (w1x, w1y, b1, w2, b2, w3, b3)

    flops = 2 * B * (x_size * hidden + y_size * hidden + hidden * hidden + hidden)
    bytes_accessed = (
        B * (x_size * x.dtype.itemsize + y_size * y.dtype.itemsize)  # act reads
        + B * 4                                                      # out write
        + sum(int(w.size) * w.dtype.itemsize for w in weights))      # weights
    cost = pl.CostEstimate(flops=flops, transcendentals=0,
                           bytes_accessed=bytes_accessed)

    tile_b = max(8, _round_up(tile_b, 8))

    if B <= tile_b:
        # Single whole-array block, no grid: every operand stays VMEM-resident
        # via memory_space-only specs (no block-index / pipelining machinery).
        vmem = pl.BlockSpec(memory_space=pltpu.MemorySpace.VMEM)
        return pl.pallas_call(
            mine_kernel,
            out_shape=jax.ShapeDtypeStruct((B, 1), jnp.float32),
            in_specs=[vmem] * 9,
            out_specs=vmem,
            cost_estimate=cost,
        )(x, y, *weights)

    # Large batch: 1-D "parallel" grid over batch tiles.  No padding: the
    # ragged last block is handled by Pallas (out-of-bounds output rows are
    # dropped; garbage input rows only affect those dropped rows because the
    # computation is purely rowwise).  Weights/biases use constant index_maps
    # so they stay VMEM-resident across the grid while the activation tiles
    # are double-buffered.
    n_tiles = (B + tile_b - 1) // tile_b
    if n_tiles > 1 and n_tiles % 2 == 1:
        # v7x megacore: prefer an even tile count so both TensorCores get
        # balanced work; shrink the tile a little instead of idling one core.
        n_tiles += 1
        tile_b = max(8, _round_up((B + n_tiles - 1) // n_tiles, 8))
        n_tiles = (B + tile_b - 1) // tile_b

    x_spec = pl.BlockSpec((tile_b, x_size), lambda i: (i, 0))
    y_spec = pl.BlockSpec((tile_b, y_size), lambda i: (i, 0))
    weight_specs = [pl.BlockSpec(w.shape, lambda i: (0, 0)) for w in weights]
    out_spec = pl.BlockSpec((tile_b, 1), lambda i: (i, 0))

    return pl.pallas_call(
        mine_kernel,
        out_shape=jax.ShapeDtypeStruct((B, 1), jnp.float32),
        grid=(n_tiles,),
        in_specs=[x_spec, y_spec] + weight_specs,
        out_specs=out_spec,
        cost_estimate=cost,
        compiler_params=pltpu.CompilerParams(
            dimension_semantics=("parallel",),
            vmem_limit_bytes=32 * 1024 * 1024),
    )(x, y, *weights)


def mine_forward_ref(x, y, w1x, w1y, b1, w2, b2, w3, b3, act_dtype=None):
    """Pure-JAX reference (same math as the PyTorch module)."""
    f32 = jnp.float32
    if act_dtype is not None:
        rt = lambda a: a.astype(act_dtype).astype(f32)   # bf16 round-trip cast
        x, y, w1x, w1y, w2, w3 = (rt(a) for a in (x, y, w1x, w1y, w2, w3))

    def lrelu(v):
        return jnp.where(v > 0, v, 0.2 * v)

    h = lrelu(x @ w1x + y @ w1y + b1)
    if act_dtype is not None:
        h = h.astype(act_dtype).astype(f32)
    h = lrelu(h @ w2 + b2)
    return lrelu(h @ w3.T + b3)      # w3 stored as (1, hidden)


def init_params(key, x_size, y_size, hidden_size):
    """Deterministic init mimicking nn.Linear default (uniform +-1/sqrt(fan_in)).

    Weights are stored pre-transposed as (in_features, out_features); w3 is a
    (1, hidden) row so the last layer can be a lane reduction; biases are 2-D.
    """
    ks = jax.random.split(key, 6)

    def lin_w(k, fan_in, fan_out):
        bound = 1.0 / jnp.sqrt(fan_in)
        return jax.random.uniform(k, (fan_in, fan_out), jnp.float32, -bound, bound)

    def lin_b(k, fan_in, fan_out):
        bound = 1.0 / jnp.sqrt(fan_in)
        return jax.random.uniform(k, (1, fan_out), jnp.float32, -bound, bound)

    w1x = lin_w(ks[0], x_size, hidden_size)            # fc1_x (no bias)
    w1y = lin_w(ks[1], y_size, hidden_size)            # fc1_y (no bias)
    b1 = jnp.zeros((1, hidden_size), jnp.float32)      # fc1_bias (zeros at init)
    w2 = lin_w(ks[2], hidden_size, hidden_size)        # fc2
    b2 = lin_b(ks[3], hidden_size, hidden_size)
    w3 = lin_w(ks[4], hidden_size, 1).T                # fc3 weight as (1, hidden)
    b3 = lin_b(ks[5], hidden_size, 1)                  # (1, 1)
    return w1x, w1y, b1, w2, b2, w3, b3


if __name__ == "__main__":
    key = jax.random.PRNGKey(0)
    x_size, y_size, hidden_size = 32, 16, 32
    kx, ky, kp, kx2, ky2 = jax.random.split(key, 5)
    params = init_params(kp, x_size, y_size, hidden_size)

    # 1) Small-batch path (single VMEM-resident block, no grid), float32.
    B = 8
    x = jax.random.normal(kx, (B, x_size), jnp.float32)
    y = jax.random.normal(ky, (B, y_size), jnp.float32)
    out = jax.block_until_ready(mine_forward(x, y, *params))
    ref = mine_forward_ref(x, y, *params)
    assert out.shape == (B, 1), out.shape
    assert jnp.allclose(out, ref, atol=1e-4, rtol=1e-4), (
        "small-batch mismatch vs pure-JAX reference")

    # 2) Batched path, float32: grid over batch tiles, ragged last tile, and
    #    the odd->even tile-count bump (1040 rows @ tile_b=256 -> 6 tiles of 176,
    #    last tile only 160 valid rows; no wrapper pad / slice involved).
    Bb = 1040
    xb = jax.random.normal(kx2, (Bb, x_size), jnp.float32)
    yb = jax.random.normal(ky2, (Bb, y_size), jnp.float32)
    outb = jax.block_until_ready(mine_forward(xb, yb, *params, tile_b=256))
    refb = mine_forward_ref(xb, yb, *params)
    assert outb.shape == (Bb, 1), outb.shape
    assert jnp.allclose(outb, refb, atol=1e-4, rtol=1e-4), (
        "batched mismatch vs pure-JAX reference")

    # 3) Batched path with bfloat16 activation/weight streaming (halved HBM
    #    traffic), compared against a reference using the same bf16 casts.
    outb16 = jax.block_until_ready(
        mine_forward(xb, yb, *params, tile_b=256, act_dtype=jnp.bfloat16))
    refb16 = mine_forward_ref(xb, yb, *params, act_dtype=jnp.bfloat16)
    assert outb16.shape == (Bb, 1), outb16.shape
    assert jnp.allclose(outb16, refb16, atol=5e-2, rtol=5e-2), (
        "bf16 streaming mismatch vs bf16-cast reference")

    print("KERNEL_OK")
</pallas_src>

<mosaic_0001>
module attributes {stable_mosaic.version = 11 : i64} {
  func.func @mine_kernel(%arg0: memref<8x32xf32, #tpu.memory_space<vmem>>, %arg1: memref<8x16xf32, #tpu.memory_space<vmem>>, %arg2: memref<32x32xf32, #tpu.memory_space<vmem>>, %arg3: memref<16x32xf32, #tpu.memory_space<vmem>>, %arg4: memref<1x32xf32, #tpu.memory_space<vmem>>, %arg5: memref<32x32xf32, #tpu.memory_space<vmem>>, %arg6: memref<1x32xf32, #tpu.memory_space<vmem>>, %arg7: memref<1x32xf32, #tpu.memory_space<vmem>>, %arg8: memref<1x1xf32, #tpu.memory_space<vmem>>, %arg9: memref<8x1xf32, #tpu.memory_space<vmem>>) attributes {dimension_semantics = [], scalar_prefetch = 0 : i64, scratch_operands = 0 : i64, tpu.core_type = #tpu.core_type<tc>} {
    %c0 = arith.constant 0 : index
    %c0_0 = arith.constant 0 : index
    %0 = vector.load %arg0[%c0, %c0_0] : memref<8x32xf32, #tpu.memory_space<vmem>>, vector<8x32xf32>
    %c0_1 = arith.constant 0 : index
    %c0_2 = arith.constant 0 : index
    %1 = vector.load %arg2[%c0_1, %c0_2] : memref<32x32xf32, #tpu.memory_space<vmem>>, vector<32x32xf32>
    %cst = arith.constant dense<0.000000e+00> : vector<8x32xf32>
    %2 = tpu.matmul %0, %1, %cst {dimension_numbers = #tpu.dot_dimension_numbers<[1], [0], [0], [1], [0, 0, 1, 1], [], []>} : vector<8x32xf32>, vector<32x32xf32>, vector<8x32xf32> -> vector<8x32xf32>
    %c0_3 = arith.constant 0 : index
    %c0_4 = arith.constant 0 : index
    %3 = vector.load %arg1[%c0_3, %c0_4] : memref<8x16xf32, #tpu.memory_space<vmem>>, vector<8x16xf32>
    %c0_5 = arith.constant 0 : index
    %c0_6 = arith.constant 0 : index
    %4 = vector.load %arg3[%c0_5, %c0_6] : memref<16x32xf32, #tpu.memory_space<vmem>>, vector<16x32xf32>
    %cst_7 = arith.constant dense<0.000000e+00> : vector<8x32xf32>
    %5 = tpu.matmul %3, %4, %cst_7 {dimension_numbers = #tpu.dot_dimension_numbers<[1], [0], [0], [1], [0, 0, 1, 1], [], []>} : vector<8x16xf32>, vector<16x32xf32>, vector<8x32xf32> -> vector<8x32xf32>
    %6 = arith.addf %2, %5 : vector<8x32xf32>
    %c0_8 = arith.constant 0 : index
    %c0_9 = arith.constant 0 : index
    %7 = vector.load %arg4[%c0_8, %c0_9] : memref<1x32xf32, #tpu.memory_space<vmem>>, vector<1x32xf32>
    %8 = vector.broadcast %7 : vector<1x32xf32> to vector<8x32xf32>
    %9 = arith.addf %6, %8 : vector<8x32xf32>
    %cst_10 = arith.constant 2.000000e-01 : f32
    %10 = vector.broadcast %cst_10 : f32 to vector<8x32xf32>
    %11 = arith.mulf %10, %9 : vector<8x32xf32>
    %12 = arith.maximumf %9, %11 : vector<8x32xf32>
    %c0_11 = arith.constant 0 : index
    %c0_12 = arith.constant 0 : index
    %13 = vector.load %arg5[%c0_11, %c0_12] : memref<32x32xf32, #tpu.memory_space<vmem>>, vector<32x32xf32>
    %cst_13 = arith.constant dense<0.000000e+00> : vector<8x32xf32>
    %14 = tpu.matmul %12, %13, %cst_13 {dimension_numbers = #tpu.dot_dimension_numbers<[1], [0], [0], [1], [0, 0, 1, 1], [], []>} : vector<8x32xf32>, vector<32x32xf32>, vector<8x32xf32> -> vector<8x32xf32>
    %c0_14 = arith.constant 0 : index
    %c0_15 = arith.constant 0 : index
    %15 = vector.load %arg6[%c0_14, %c0_15] : memref<1x32xf32, #tpu.memory_space<vmem>>, vector<1x32xf32>
    %16 = vector.broadcast %15 : vector<1x32xf32> to vector<8x32xf32>
    %17 = arith.addf %14, %16 : vector<8x32xf32>
    %cst_16 = arith.constant 2.000000e-01 : f32
    %18 = vector.broadcast %cst_16 : f32 to vector<8x32xf32>
    %19 = arith.mulf %18, %17 : vector<8x32xf32>
    %20 = arith.maximumf %17, %19 : vector<8x32xf32>
    %c0_17 = arith.constant 0 : index
    %c0_18 = arith.constant 0 : index
    %21 = vector.load %arg7[%c0_17, %c0_18] : memref<1x32xf32, #tpu.memory_space<vmem>>, vector<1x32xf32>
    %22 = vector.broadcast %21 : vector<1x32xf32> to vector<8x32xf32>
    %23 = arith.mulf %20, %22 : vector<8x32xf32>
    %cst_19 = arith.constant dense<0.000000e+00> : vector<8xf32>
    %24 = vector.multi_reduction <add>, %23, %cst_19 [1] : vector<8x32xf32> to vector<8xf32>
    %25 = vector.shape_cast %24 : vector<8xf32> to vector<8x1xf32>
    %c0_20 = arith.constant 0 : index
    %c0_21 = arith.constant 0 : index
    %26 = vector.load %arg8[%c0_20, %c0_21] : memref<1x1xf32, #tpu.memory_space<vmem>>, vector<1x1xf32>
    %27 = vector.broadcast %26 : vector<1x1xf32> to vector<8x1xf32>
    %28 = arith.addf %25, %27 : vector<8x1xf32>
    %cst_22 = arith.constant 2.000000e-01 : f32
    %29 = vector.broadcast %cst_22 : f32 to vector<8x1xf32>
    %30 = arith.mulf %29, %28 : vector<8x1xf32>
    %31 = arith.maximumf %28, %30 : vector<8x1xf32>
    %c0_23 = arith.constant 0 : index
    %c0_24 = arith.constant 0 : index
    %32 = vector.load %arg9[%c0_23, %c0_24] : memref<8x1xf32, #tpu.memory_space<vmem>>, vector<8x1xf32>
    tpu.vector_store %arg9[%c0_23, %c0_24], %31 {strides = array<i32>} : memref<8x1xf32, #tpu.memory_space<vmem>>, vector<8x1xf32>,
    return
  }
}

</mosaic_0001>

<bundles_post_ra>
// kernel: mine_forward.1
= control target key start
LH: loop header
LB: loop body
LE: loop exit
PB: predicated region body
PF: predicated region fallthrough
CT: control target
= control target key end

     0   :  { %s720_s0 = inlined_call_operand.hbm [shape: f32[8,32], index: 0, kind: input, shape index: {}]   ;;  %s721_s1 = inlined_call_operand.hbm [shape: f32[8,16], index: 1, kind: input, shape index: {}]   ;;  %s722_s2 = inlined_call_operand.hbm [shape: f32[32,32], index: 2, kind: input, shape index: {}]   ;;  %s723_s3 = inlined_call_operand.hbm [shape: f32[16,32], index: 3, kind: input, shape index: {}]   ;;  %s724_s4 = inlined_call_operand.vmem [shape: f32[1,32], index: 4, kind: input, shape index: {}]   ;;  %s725_s5 = inlined_call_operand.hbm [shape: f32[32,32], index: 5, kind: input, shape index: {}]   ;;  %s726_s6 = inlined_call_operand.vmem [shape: f32[1,32], index: 6, kind: input, shape index: {}]   ;;  %s727_s7 = inlined_call_operand.vmem [shape: f32[1,32], index: 7, kind: input, shape index: {}]   ;;  %s728_s8 = inlined_call_operand.<no memory space> [shape: f32[1,1], index: 8, kind: input, shape index: {}]   ;;  %s729_s9 = inlined_call_operand.vmem [shape: f32[8,1], index: 9, kind: output, shape index: {}]  }
   0x1   :  { %v14_v0 = vstv %s728_s8 }
   0x2   :  { %15 = vst [vmem:[#allocation2] sm:$0x1] %v14_v0 }
   0x3   :  { %16 = vsyncpa [#allocation4], 0 }
   0x4   :  { %17 = vsyncpa [#allocation6], 0 }
   0x5   :  { %18 = vsyncpa [#allocation9], 0  ;;  %s570_s11 = smov [#allocation5]   ;;  %s454_s15 = scalar_lea.hbm %s721_s1, 128 }
   0x6   :  { %s35_s12 = sshll.u32 %s570_s11, 4  ;;  %p455_p0 = scmp.ne.s32.totalorder %s721_s1, %s454_s15  ;;  %s36_s12 = int_to_ptr.vmem [resolvable:$true] %s35_s12 }
   0x7   :  { %p458_p1 = scmp.lt.u32.totalorder %s454_s15, %s721_s1 }
   0x9   :  { %p460_p2 = pnand %p458_p1, %p455_p0 }
   0xb   :  { %463 = shalt.err (!%p460_p2)
}
   0xc   :  { %s464_s8 = scalar_lea.vmem %s36_s12, 128  ;;  %p469_p4 = scmp.lt.s32.totalorder %s36_s12, %s36_s12 }
   0xd   :  { %p465_p3 = scmp.ne.s32.totalorder %s36_s12, %s464_s8  ;;  %p470_p5 = scmp.lt.s32.totalorder %s464_s8, %s464_s8 }
   0xf   :  { %p471_p6 = por %p470_p5, %p469_p4 }
  0x11   :  { %p472_p7 = pnand %p471_p6, %p465_p3 }
  0x13   :  { %475 = shalt.err (!%p472_p7)
}
  0x14   :  { %38 = dma.hbm_to_vmem [thread:$0]  %s721_s1, 128, %s36_s12, [#allocation6]  }
  0x15   :  { %s571_s22 = smov [#allocation8]   ;;  %s572_s24 = smov [#allocation3]  }
  0x16   :  { %s56_s23 = sshll.u32 %s571_s22, 4  ;;  %s25_s25 = sshll.u32 %s572_s24, 4  ;;  %s57_s23 = int_to_ptr.vmem [resolvable:$true] %s56_s23  ;;  %s26_s25 = int_to_ptr.vmem [resolvable:$true] %s25_s25 }
  0x17   :  { %s476_s28 = scalar_lea.hbm %s723_s3, 256 }
  0x18   :  { %p477_p8 = scmp.ne.s32.totalorder %s723_s3, %s476_s28  ;;  %p480_p9 = scmp.lt.u32.totalorder %s476_s28, %s723_s3 }
  0x1a   :  { %p482_p10 = pnand %p480_p9, %p477_p8 }
  0x1c   :  { %485 = shalt.err (!%p482_p10)
}
  0x1d   :  { %s486_s1 = scalar_lea.vmem %s57_s23, 256  ;;  %p491_p12 = scmp.lt.s32.totalorder %s57_s23, %s57_s23 }
  0x1e   :  { %p487_p11 = scmp.ne.s32.totalorder %s57_s23, %s486_s1  ;;  %p492_p13 = scmp.lt.s32.totalorder %s486_s1, %s486_s1 }
  0x20   :  { %p493_p0 = por %p492_p13, %p491_p12 }
  0x22   :  { %p494_p1 = pnand %p493_p0, %p487_p11 }
  0x24   :  { %497 = shalt.err (!%p494_p1)
}
  0x25   :  { %s573_s12 = smov 128   ;;  %s574_s13 = smov 8  }
  0x26   :  { %62 = dma.hbm_to_vmem [thread:$0]  %s723_s3, 256, %s57_s23, [#allocation9], %s573_s12, %s573_s12, %s574_s13  }
  0x27   :  { %s498_s18 = scalar_lea.hbm %s720_s0, 128 }
  0x28   :  { %p499_p2 = scmp.ne.s32.totalorder %s720_s0, %s498_s18  ;;  %p502_p3 = scmp.lt.u32.totalorder %s498_s18, %s720_s0 }
  0x2a   :  { %p504_p4 = pnand %p502_p3, %p499_p2 }
  0x2c   :  { %507 = shalt.err (!%p504_p4)
}
  0x2d   :  { %s508_s22 = scalar_lea.vmem %s26_s25, 128  ;;  %p513_p6 = scmp.lt.s32.totalorder %s26_s25, %s26_s25 }
  0x2e   :  { %p509_p5 = scmp.ne.s32.totalorder %s26_s25, %s508_s22  ;;  %p514_p7 = scmp.lt.s32.totalorder %s508_s22, %s508_s22 }
  0x30   :  { %p515_p8 = por %p514_p7, %p513_p6 }
  0x32   :  { %p516_p9 = pnand %p515_p8, %p509_p5 }
  0x34   :  { %519 = shalt.err (!%p516_p9)
}
  0x35   :  { %28 = dma.hbm_to_vmem [thread:$0]  %s720_s0, 128, %s26_s25, [#allocation4]  }
  0x36   :  { %s575_s24 = smov [#allocation7]   ;;  %s576_s27 = smov [#allocation10]  }
  0x37   :  { %s44_s26 = sshll.u32 %s575_s24, 4  ;;  %s70_s28 = sshll.u32 %s576_s27, 4  ;;  %s45_s26 = int_to_ptr.vmem [resolvable:$true] %s44_s26  ;;  %s71_s28 = int_to_ptr.vmem [resolvable:$true] %s70_s28 }
  0x38   :  { %s520_s10 = scalar_lea.hbm %s722_s2, 512 }
  0x39   :  { %p521_p10 = scmp.ne.s32.totalorder %s722_s2, %s520_s10  ;;  %p524_p11 = scmp.lt.u32.totalorder %s520_s10, %s722_s2 }
  0x3b   :  { %p526_p12 = pnand %p524_p11, %p521_p10 }
  0x3d   :  { %529 = shalt.err (!%p526_p12)
}
  0x3e   :  { %s530_s0 = scalar_lea.vmem %s45_s26, 512  ;;  %p535_p0 = scmp.lt.s32.totalorder %s45_s26, %s45_s26 }
  0x3f   :  { %p531_p13 = scmp.ne.s32.totalorder %s45_s26, %s530_s0  ;;  %p536_p1 = scmp.lt.s32.totalorder %s530_s0, %s530_s0 }
  0x41   :  { %p537_p2 = por %p536_p1, %p535_p0 }
  0x43   :  { %p538_p3 = pnand %p537_p2, %p531_p13 }
  0x45   :  { %541 = shalt.err (!%p538_p3)
}
  0x46   :  { %50 = dma.hbm_to_vmem [thread:$0]  %s722_s2, 512, %s45_s26, [#allocation6], %s573_s12, %s573_s12, %s574_s13  }
  0x47   :  { %s542_s19 = scalar_lea.hbm %s725_s5, 512 }
  0x48   :  { %p543_p4 = scmp.ne.s32.totalorder %s725_s5, %s542_s19  ;;  %p546_p5 = scmp.lt.u32.totalorder %s542_s19, %s725_s5 }
  0x4a   :  { %p548_p6 = pnand %p546_p5, %p543_p4 }
  0x4c   :  { %551 = shalt.err (!%p548_p6)
}
  0x4d   :  { %s552_s3 = scalar_lea.vmem %s71_s28, 512  ;;  %p557_p8 = scmp.lt.s32.totalorder %s71_s28, %s71_s28 }
  0x4e   :  { %p553_p7 = scmp.ne.s32.totalorder %s71_s28, %s552_s3  ;;  %p558_p9 = scmp.lt.s32.totalorder %s552_s3, %s552_s3 }
  0x50   :  { %p559_p10 = por %p558_p9, %p557_p8 }
  0x52   :  { %p560_p11 = pnand %p559_p10, %p553_p7 }
  0x54   :  { %563 = shalt.err (!%p560_p11)
}
  0x55   :  { %76 = dma.hbm_to_vmem [thread:$0]  %s725_s5, 512, %s71_s28, [#allocation9], %s573_s12, %s573_s12, %s574_s13  }
  0x56   :  { %564 = dma.done.wait [#allocation4], 128  }
  0x57   :  { %565 = vsyncadd [#allocation4], 4294967168 }
  0x58   :  { %566 = dma.done.wait [#allocation6], 640  }
  0x59   :  { %567 = vsyncadd [#allocation6], 4294966656 }
  0x5a   :  { %568 = dma.done.wait [#allocation9], 768  }
  0x5b   :  { %569 = vsyncadd [#allocation9], 4294966528  ;;  %v577_v1 = vmov 0.0|0.0   ;;  %vm578_vm0 = vmmov 0   ;;  %v579_v2 = vmov 0.0   ;;  %v99_v3 = vld [vmem:[#allocation7] sm:$0xff] }
  0x5c   :  { %432 = vmatprep.subr.bf16.mxu1 %v577_v1  ;;  %429 = vmatprep.subr.bf16.mxu0 %v577_v1  ;;  %v100_v4 = vld [vmem:[#allocation7 + $0x8] sm:$0xff]  ;;  %v104_v5 = vld [vmem:[#allocation8] sm:$0xff]  ;;  %v101_v8 = vld [vmem:[#allocation7 + $0x10] sm:$0xff]  ;;  %vm106_vm1 = vcmask 130048   ;;  %vm180_vm2 = vcmask 261120   ;;  %vm371_vm3 = vcmask 7168  }
  0x5d   :  { %404 = vmatprep.mubr.msk.f32.mxu0 %vm578_vm0, %v579_v2  ;;  %415 = vmatprep.mubr.msk.f32.mxu1 %vm578_vm0, %v579_v2  ;;  %v433_v6 = vpack.c.bf16 %v100_v4, %v99_v3  ;;  %v105_v7 = vld [vmem:[#allocation8 + $0x8] sm:$0xff]  ;;  %v102_v9 = vld [vmem:[#allocation7 + $0x18] sm:$0xff]  ;;  %v98_v13 = vld [vmem:[#allocation3] sm:$0xff] }
  0x5e   :  { %v430_v10 = vpack.c.bf16 %v105_v7, %v104_v5  ;;  %v436_v11 = vpack.c.bf16 %v102_v9, %v101_v8  ;;  %v103_v12 = vld [vmem:[#allocation5] sm:$0xff]  ;;  %v264_v14 = vld [vmem:[#allocation10] sm:$0xff]  ;;  %v266_v17 = vld [vmem:[#allocation10 + $0x10] sm:$0xff] }
  0x5f   :  { %434 = vmatpush3.bf16.msra.mxu1 %v433_v6  ;;  %v265_v15 = vld [vmem:[#allocation10 + $0x8] sm:$0xff]  ;;  %v267_v18 = vld [vmem:[#allocation10 + $0x18] sm:$0xff] }
  0x60   :  { %431 = vmatpush3.bf16.msra.mxu0 %v430_v10  ;;  %435 = vmatprep.subr.bf16.mxu1 %v577_v1  ;;  %v439_v16 = vpack.c.bf16 %v265_v15, %v264_v14  ;;  %v442_v19 = vpack.c.bf16 %v267_v18, %v266_v17  ;;  %v382_v23 = vld [vmem:[%s724_s4] ss:$0 sm:$0xff] }
  0x61   :  { %438 = vmatprep.subr.bf16.mxu0 %v577_v1  ;;  %v383_v29 = vld [vmem:[%s726_s6] ss:$0 sm:$0xff] }
  0x62   :  { %v385_v34 = vld [vmem:[%s727_s7] ss:$0 sm:$0xff] }
  0x63   :  { %437 = vmatpush3.bf16.msra.mxu1 %v436_v11  ;;  %405 = vmatmul.mubr.msk.f32.vlgmr.msra.gmra.mrb[0].mxu0 %vm106_vm1, %v103_v12  ;;  %v386_v38 = vld [vmem:[#allocation2] ss:$0 sm:$0xff] }
  0x64   :  { %426 = vmatprep.mubr.msk.f32.mxu0 %vm578_vm0, %v579_v2  ;;  %440 = vmatpush3.bf16.msra.mxu0 %v439_v16 }
  0x65   :  { %441 = vmatprep.subr.bf16.mxu0 %v577_v1 }
  0x66   :  { %416 = vmatmul.mubr.msk.f32.vlgmr.msra.gmra.mrb[0].mxu1 %vm180_vm2, %v98_v13 }
  0x68   :  { %443 = vmatpush3.bf16.msra.mxu0 %v442_v19 }
 0x136   :  { %v176_v20 = vpop.f32.mrb[0].mxu0 }
 0x137   :  { %v406_v21 = vpop.f32.mrb[1].mxu0 }
 0x139   :  { %v250_v22 = vpop.f32.mrb[0].mxu1 }
 0x13a   :  { %v251_v24 = vadd.f32 %v250_v22, %v176_v20  ;;  %v417_v25 = vpop.f32.mrb[1].mxu1 }
 0x13c   :  { %v261_v26 = vadd.f32 %v382_v23, %v251_v24 }
 0x13e   :  { %v262_v27 = vmul.f32 0.2, %v261_v26 }
 0x140   :  { %v263_v28 = vmax.f32 %v261_v26, %v262_v27 }
 0x142   :  { %427 = vmatmul.mubr.msk.f32.vlgmr.msra.gmra.mrb[2].mxu0 %vm180_vm2, %v263_v28 }
 0x215   :  { %v344_v30 = vpop.f32.mrb[2].mxu0 }
 0x216   :  { %v345_v31 = vadd.f32 %v383_v29, %v344_v30  ;;  %v428_v32 = vpop.f32.mrb[3].mxu0 }
 0x218   :  { %v348_v33 = vmul.f32 0.2, %v345_v31 }
 0x21a   :  { %v349_v35 = vmax.f32 %v345_v31, %v348_v33 }
 0x21c   :  { %v357_v36 = vmul.f32 %v385_v34, %v349_v35 }
 0x21e   :  { %v358_v37 = vsel %vm180_vm2, %v357_v36, 0.0 }
 0x21f   :  { %359 = vadd.xlane.f32.xlu0 %v358_v37 }
 0x2ac   :  { %v360_v39 = vpop.xlane.xlu0 %359 }
 0x2ad   :  { %v368_v40 = vadd.f32 %v386_v38, %v360_v39 }
 0x2af   :  { %v369_v41 = vmul.f32 0.2, %v368_v40 }
 0x2b1   :  { %v370_v42 = vmax.f32 %v368_v40, %v369_v41 }
 0x2b3   :  { %372 = vst.msk [vmem:[%s729_s9] sm:$0xff] %vm371_vm3, %v370_v42 }
 0x2b4   :  { %377 = vsyncpa [#allocation4], 1 }
 0x2b5   :  { %378 = vsyncpa [#allocation6], 1 }
 0x2b6   :  { %379 = vsyncpa [#allocation9], 1 }

</bundles_post_ra>
